<compile_context>
chip_gen: v5e
topology: v5e:2x2
jax: 0.10.0
libtpu: 0.0.40
codegen_flags: <defaults>
</compile_context>

<pallas_src>
import functools

import jax
import jax.numpy as jnp
import numpy as np
from jax.experimental import pallas as pl
from jax.experimental.pallas import tpu as pltpu


# ----------------------------------------------------------------------------
# Kernel 1: weight sampling + KL (tiled over rows, KL accumulated in-place)
# ----------------------------------------------------------------------------
def _sample_kl_kernel(mu_ref, rho_ref, eps_ref, w_ref, kl_ref, *,
                      sigma_prior, mu_prior, regime, rows_total, tr):
    pid = pl.program_id(0)

    mu = mu_ref[...]
    rho = rho_ref[...]
    eps = eps_ref[...]

    # rho_to_std
    if regime in (1, 3):
        sigma = jnp.where(rho < 50.0, jnp.log1p(jnp.exp(rho)), rho)
    elif regime == 2:
        z = sigma_prior + rho
        # same overflow guard as regimes 1/3; identical for z >= 50 up to fp eps
        sigma = jnp.where(z < 50.0, jnp.log1p(jnp.exp(z)), z)
    else:
        raise ValueError("To implement")

    w = mu + sigma * eps
    w_ref[...] = w

    # KL term, simplified but exactly equivalent to
    #   logN(w; mu, sigma) - logN(w; mu_prior, sigma_prior):
    #   (w - mu)^2 / (2 sigma^2) == eps^2 / 2, and the 0.5*log(2*pi) constants cancel.
    log_sp = float(np.log(sigma_prior))
    inv_2sp2 = float(1.0 / (2.0 * sigma_prior * sigma_prior))
    diff = (log_sp - jnp.log(sigma) - 0.5 * eps * eps
            + (w - mu_prior) ** 2 * inv_2sp2)

    # Mask rows of a possibly-ragged last block (undefined VMEM beyond the array).
    rows_valid = rows_total - pid * tr
    row_idx = jax.lax.broadcasted_iota(jnp.int32, diff.shape, 0)
    diff = jnp.where(row_idx < rows_valid, diff, 0.0)

    @pl.when(pid == 0)
    def _():
        kl_ref[...] = jnp.zeros_like(kl_ref)

    kl_ref[...] += jnp.sum(diff).reshape(1, 1)


# ----------------------------------------------------------------------------
# Kernel 2: conv2d as im2col matmul (MXU hot path, bf16 in / f32 accumulate)
# ----------------------------------------------------------------------------
def _conv_matmul_kernel(p_ref, w_ref, o_ref):
    o_ref[...] = jnp.dot(
        p_ref[...], w_ref[...], preferred_element_type=jnp.float32
    ).astype(o_ref.dtype)


class ConvBnnPallas:
    """JAX/Pallas port of Conv_bnn (bias=False path, init_type='fixed')."""

    def __init__(self, in_size, out_size, init_rho_post, init_mu_post,
                 sigma_prior, mu_prior, stride=1, padding=0, dilation=1,
                 kernel_size=3, regime=1):
        self.in_size = in_size
        self.out_size = out_size
        self.sigma_prior = float(sigma_prior)
        self.mu_prior = float(mu_prior)
        self.stride = stride
        self.padding = padding
        self.dilation = dilation
        self.kernel_size = kernel_size
        self.regime = regime
        # init_type='fixed': ones * init_value.  Parameters are stored directly in
        # the im2col matmul layout: rows ordered (kh, kw, c), columns = out channels.
        rows = kernel_size * kernel_size * in_size
        self.rows = rows
        self.weight_mu = jnp.full((rows, out_size), init_mu_post, jnp.float32)
        self.weight_rho = jnp.full((rows, out_size), init_rho_post, jnp.float32)

    # ---- sampling + KL (Pallas, tiled) -------------------------------------
    def sample_w_and_kl(self, eps):
        rows, out_ch = self.weight_mu.shape
        tr = rows if rows <= 512 else 512            # row tile (512 % 8 == 0)
        grid = pl.cdiv(rows, tr)

        kern = functools.partial(
            _sample_kl_kernel,
            sigma_prior=self.sigma_prior,
            mu_prior=self.mu_prior,
            regime=self.regime,
            rows_total=rows,
            tr=tr,
        )
        w_mat, kl = pl.pallas_call(
            kern,
            out_shape=(
                jax.ShapeDtypeStruct((rows, out_ch), jnp.float32),
                jax.ShapeDtypeStruct((1, 1), jnp.float32),
            ),
            grid_spec=pltpu.PrefetchScalarGridSpec(
                num_scalar_prefetch=0,
                grid=(grid,),
                in_specs=[pl.BlockSpec((tr, out_ch), lambda i: (i, 0))] * 3,
                out_specs=(
                    pl.BlockSpec((tr, out_ch), lambda i: (i, 0)),
                    pl.BlockSpec((1, 1), lambda i: (0, 0)),   # resident KL accumulator
                ),
            ),
            compiler_params=pltpu.CompilerParams(
                dimension_semantics=("arbitrary",)),
        )(self.weight_mu, self.weight_rho, eps)
        return w_mat, kl[0, 0]

    # ---- im2col glue (plain JAX) -------------------------------------------
    def _im2col(self, x_nhwc):
        k, s, d = self.kernel_size, self.stride, self.dilation
        N, H, W, C = x_nhwc.shape
        oh = (H - d * (k - 1) - 1) // s + 1
        ow = (W - d * (k - 1) - 1) // s + 1
        patches = []
        for i in range(k):
            for j in range(k):
                patches.append(
                    x_nhwc[:, i * d: i * d + s * (oh - 1) + 1: s,
                              j * d: j * d + s * (ow - 1) + 1: s, :]
                )
        p = jnp.stack(patches, axis=3)                 # (N, oh, ow, K*K, C)
        return p.reshape(N * oh * ow, k * k * C), oh, ow

    # ---- forward -------------------------------------------------------------
    def forward(self, x_nchw, key):
        O, C, K = self.out_size, self.in_size, self.kernel_size
        rows = self.rows

        eps = jax.random.normal(key, (rows, O), jnp.float32)
        w_mat, appro_kl = self.sample_w_and_kl(eps)    # (K*K*C, O) f32

        # (O, C, K, K) view only for the Python-facing return / reference conv.
        w_oikk = jnp.transpose(w_mat.reshape(K, K, C, O), (3, 2, 0, 1))

        # Lane-dense weight matrix for the MXU: pad O to a multiple of 128, bf16.
        O_pad = ((O + 127) // 128) * 128
        w_b = jnp.pad(w_mat, ((0, 0), (0, O_pad - O))).astype(jnp.bfloat16)

        # NCHW -> NHWC in bf16 BEFORE im2col (half-width patch materialization).
        x = jnp.transpose(x_nchw, (0, 2, 3, 1)).astype(jnp.bfloat16)
        if self.padding:
            p = self.padding
            x = jnp.pad(x, ((0, 0), (p, p), (p, p), (0, 0)))

        patches, oh, ow = self._im2col(x)              # (M, K*K*C) bf16
        M, Kdim = patches.shape

        # M tile: large to amortize per-step overhead; keep >= 2 grid steps
        # (two v7x TensorCores) and stay within a v7x-safe VMEM budget.
        TM = 512
        while TM > 128 and pl.cdiv(M, TM) < 2:
            TM //= 2

        def _vmem_need(tm):  # double-buffered bf16 inputs + f32 output
            return 2 * (tm * Kdim * 2 + Kdim * O_pad * 2 + tm * O_pad * 4)

        while TM > 128 and _vmem_need(TM) > (40 << 20):
            TM //= 2
        vmem_limit = int(min(max(_vmem_need(TM) + (4 << 20), 32 << 20), 48 << 20))

        out_mat = pl.pallas_call(
            _conv_matmul_kernel,
            out_shape=jax.ShapeDtypeStruct((M, O_pad), jnp.float32),
            grid_spec=pltpu.PrefetchScalarGridSpec(
                num_scalar_prefetch=0,
                grid=(pl.cdiv(M, TM),),                # ragged last block: masked store
                in_specs=[
                    pl.BlockSpec((TM, Kdim), lambda i: (i, 0)),
                    pl.BlockSpec((Kdim, O_pad), lambda i: (0, 0)),
                ],
                out_specs=pl.BlockSpec((TM, O_pad), lambda i: (i, 0)),
            ),
            compiler_params=pltpu.CompilerParams(
                dimension_semantics=("parallel",),
                vmem_limit_bytes=vmem_limit),
        )(patches, w_b)

        N = x_nchw.shape[0]
        out_nhwc = out_mat[:, :O].reshape(N, oh, ow, O)
        out = jnp.transpose(out_nhwc, (0, 3, 1, 2))    # NCHW out

        self.appro_kl = appro_kl   # parity with torch module; do not rely on under jit
        return out, w_oikk, appro_kl


# ----------------------------------------------------------------------------
# References (plain JAX) for sanity checking
# ----------------------------------------------------------------------------
def _ref_conv(x_nchw, w_oikk, stride, padding, dilation):
    # Same bf16-operand / f32-accumulate contract as the Pallas kernel.
    return jax.lax.conv_general_dilated(
        x_nchw.astype(jnp.bfloat16), w_oikk.astype(jnp.bfloat16),
        window_strides=(stride, stride),
        padding=((padding, padding), (padding, padding)),
        rhs_dilation=(dilation, dilation),
        dimension_numbers=("NCHW", "OIHW", "NCHW"),
        preferred_element_type=jnp.float32,
    )


if __name__ == "__main__":
    key = jax.random.PRNGKey(0)
    k_x, k_eps = jax.random.split(key)

    # small shapes consistent with the module
    batch, in_size, out_size, spatial = 2, 4, 8, 16
    x = jax.random.normal(k_x, (batch, in_size, spatial, spatial), jnp.float32)

    layer = ConvBnnPallas(
        in_size=in_size, out_size=out_size,
        init_rho_post=-3.0, init_mu_post=0.1,
        sigma_prior=1.0, mu_prior=0.0,
        stride=1, padding=0, dilation=1, kernel_size=3, regime=1,
    )

    out, w_sampled, kl = layer.forward(x, k_eps)
    out = jax.block_until_ready(out)
    kl = jax.block_until_ready(kl)

    # conv check against XLA conv with the same sampled (bf16) weights
    assert out.shape == (batch, out_size, spatial - 2, spatial - 2)
    ref = _ref_conv(x, w_sampled, 1, 0, 1)
    np.testing.assert_allclose(np.asarray(out), np.asarray(ref), atol=2e-2, rtol=2e-2)

    # KL check against the un-simplified Gaussian log-density difference
    eps = jax.random.normal(k_eps, layer.weight_mu.shape, jnp.float32)
    sigma = jnp.log1p(jnp.exp(layer.weight_rho))
    w_chk = layer.weight_mu + sigma * eps
    c = -0.5 * jnp.log(2.0 * jnp.pi)
    log_post = c - jnp.log(sigma) - (w_chk - layer.weight_mu) ** 2 / (2.0 * sigma ** 2)
    log_prior = c - 0.0 - (w_chk - 0.0) ** 2 / 2.0
    kl_ref = float(jnp.sum(log_post - log_prior))
    assert np.isfinite(float(kl))
    np.testing.assert_allclose(float(kl), kl_ref, rtol=1e-3, atol=1e-2)

    print("KERNEL_OK")
</pallas_src>

<mosaic_0001>
module attributes {stable_mosaic.version = 11 : i64} {
  func.func @_sample_kl_kernel(%arg0: i32, %arg1: memref<36x8xf32, #tpu.memory_space<vmem>>, %arg2: memref<36x8xf32, #tpu.memory_space<vmem>>, %arg3: memref<36x8xf32, #tpu.memory_space<vmem>>, %arg4: memref<36x8xf32, #tpu.memory_space<vmem>>, %arg5: memref<1x1xf32, #tpu.memory_space<vmem>>) attributes {dimension_semantics = [#tpu.dimension_semantics<arbitrary>], iteration_bounds = array<i64: 1>, scalar_prefetch = 0 : i64, scratch_operands = 0 : i64, tpu.core_type = #tpu.core_type<tc>, window_params = [{transform_indices = @transform_0, window_bounds = array<i64: 36, 8>}, {transform_indices = @transform_1, window_bounds = array<i64: 36, 8>}, {transform_indices = @transform_2, window_bounds = array<i64: 36, 8>}, {transform_indices = @transform_3, window_bounds = array<i64: 36, 8>}, {pipeline_mode = #tpu.pipeline_mode<synchronous>, transform_indices = @transform_4, window_bounds = array<i64: 1, 1>}]} {
    %c0 = arith.constant 0 : index
    %c0_0 = arith.constant 0 : index
    %0 = vector.load %arg1[%c0, %c0_0] : memref<36x8xf32, #tpu.memory_space<vmem>>, vector<36x8xf32>
    %c0_1 = arith.constant 0 : index
    %c0_2 = arith.constant 0 : index
    %1 = vector.load %arg2[%c0_1, %c0_2] : memref<36x8xf32, #tpu.memory_space<vmem>>, vector<36x8xf32>
    %c0_3 = arith.constant 0 : index
    %c0_4 = arith.constant 0 : index
    %2 = vector.load %arg3[%c0_3, %c0_4] : memref<36x8xf32, #tpu.memory_space<vmem>>, vector<36x8xf32>
    %cst = arith.constant 5.000000e+01 : f32
    %3 = vector.broadcast %cst : f32 to vector<36x8xf32>
    %4 = arith.cmpf olt, %1, %3 : vector<36x8xf32>
    %5 = math.exp %1 : vector<36x8xf32>
    %6 = math.log1p %5 : vector<36x8xf32>
    %7 = arith.select %4, %6, %1 : vector<36x8xi1>, vector<36x8xf32>
    %8 = arith.mulf %7, %2 : vector<36x8xf32>
    %9 = arith.addf %0, %8 : vector<36x8xf32>
    %c0_5 = arith.constant 0 : index
    %c0_6 = arith.constant 0 : index
    %10 = vector.load %arg4[%c0_5, %c0_6] : memref<36x8xf32, #tpu.memory_space<vmem>>, vector<36x8xf32>
    tpu.vector_store %arg4[%c0_5, %c0_6], %9 {strides = array<i32>} : memref<36x8xf32, #tpu.memory_space<vmem>>, vector<36x8xf32>,
    %11 = math.log %7 : vector<36x8xf32>
    %cst_7 = arith.constant 0.000000e+00 : f32
    %12 = vector.broadcast %cst_7 : f32 to vector<36x8xf32>
    %13 = arith.subf %12, %11 : vector<36x8xf32>
    %cst_8 = arith.constant 5.000000e-01 : f32
    %14 = vector.broadcast %cst_8 : f32 to vector<36x8xf32>
    %15 = arith.mulf %14, %2 : vector<36x8xf32>
    %16 = arith.mulf %15, %2 : vector<36x8xf32>
    %17 = arith.subf %13, %16 : vector<36x8xf32>
    %cst_9 = arith.constant 0.000000e+00 : f32
    %18 = vector.broadcast %cst_9 : f32 to vector<36x8xf32>
    %19 = arith.subf %9, %18 : vector<36x8xf32>
    %20 = arith.mulf %19, %19 : vector<36x8xf32>
    %cst_10 = arith.constant 5.000000e-01 : f32
    %21 = vector.broadcast %cst_10 : f32 to vector<36x8xf32>
    %22 = arith.mulf %20, %21 : vector<36x8xf32>
    %23 = arith.addf %17, %22 : vector<36x8xf32>
    %c36_i32 = arith.constant 36 : i32
    %24 = arith.muli %arg0, %c36_i32 : i32
    %c36_i32_11 = arith.constant 36 : i32
    %25 = arith.subi %c36_i32_11, %24 : i32
    %26 = tpu.iota {dimensions = array<i32: 0>} : vector<36x8xi32>
    %27 = vector.broadcast %25 : i32 to vector<36x8xi32>
    %28 = arith.cmpi slt, %26, %27 : vector<36x8xi32>
    %cst_12 = arith.constant 0.000000e+00 : f32
    %29 = vector.broadcast %cst_12 : f32 to vector<36x8xf32>
    %30 = arith.select %28, %23, %29 : vector<36x8xi1>, vector<36x8xf32>
    %c0_i32 = arith.constant 0 : i32
    %31 = arith.cmpi eq, %arg0, %c0_i32 : i32
    %32 = arith.extui %31 : i1 to i32
    %c0_i32_13 = arith.constant 0 : i32
    %33 = arith.cmpi ne, %32, %c0_i32_13 : i32
    scf.if %33 {
      %cst_19 = arith.constant 0.000000e+00 : f32
      %42 = vector.broadcast %cst_19 : f32 to vector<1x1xf32>
      %c0_20 = arith.constant 0 : index
      %c0_21 = arith.constant 0 : index
      %43 = vector.load %arg5[%c0_20, %c0_21] : memref<1x1xf32, #tpu.memory_space<vmem>>, vector<1x1xf32>
      tpu.vector_store %arg5[%c0_20, %c0_21], %42 {strides = array<i32>} : memref<1x1xf32, #tpu.memory_space<vmem>>, vector<1x1xf32>,
    } else {
    }
    %c0_14 = arith.constant 0 : index
    %c0_15 = arith.constant 0 : index
    %34 = vector.load %arg5[%c0_14, %c0_15] : memref<1x1xf32, #tpu.memory_space<vmem>>, vector<1x1xf32>
    %35 = vector.shape_cast %30 : vector<36x8xf32> to vector<1x36x8xf32>
    %cst_16 = arith.constant dense<0.000000e+00> : vector<1xf32>
    %36 = vector.multi_reduction <add>, %35, %cst_16 [1, 2] : vector<1x36x8xf32> to vector<1xf32>
    %37 = vector.shape_cast %36 : vector<1xf32> to vector<1x1x1xf32>
    %38 = vector.extract %37[0, 0, 0] : f32 from vector<1x1x1xf32>
    %39 = vector.broadcast %38 : f32 to vector<1x1xf32>
    %40 = arith.addf %34, %39 : vector<1x1xf32>
    %c0_17 = arith.constant 0 : index
    %c0_18 = arith.constant 0 : index
    %41 = vector.load %arg5[%c0_17, %c0_18] : memref<1x1xf32, #tpu.memory_space<vmem>>, vector<1x1xf32>
    tpu.vector_store %arg5[%c0_17, %c0_18], %40 {strides = array<i32>} : memref<1x1xf32, #tpu.memory_space<vmem>>, vector<1x1xf32>,
    return
  }
  func.func @transform_0(%arg0: i32) -> (i32, i32) {
    %c0_i32 = arith.constant 0 : i32
    %c0_i32_0 = arith.constant 0 : i32
    return %arg0, %c0_i32 : i32, i32
  }
  func.func @transform_1(%arg0: i32) -> (i32, i32) {
    %c0_i32 = arith.constant 0 : i32
    %c0_i32_0 = arith.constant 0 : i32
    return %arg0, %c0_i32 : i32, i32
  }
  func.func @transform_2(%arg0: i32) -> (i32, i32) {
    %c0_i32 = arith.constant 0 : i32
    %c0_i32_0 = arith.constant 0 : i32
    return %arg0, %c0_i32 : i32, i32
  }
  func.func @transform_3(%arg0: i32) -> (i32, i32) {
    %c0_i32 = arith.constant 0 : i32
    %c0_i32_0 = arith.constant 0 : i32
    return %arg0, %c0_i32 : i32, i32
  }
  func.func @transform_4(%arg0: i32) -> (i32, i32) {
    %c0_i32 = arith.constant 0 : i32
    %c0_i32_0 = arith.constant 0 : i32
    %c0_i32_1 = arith.constant 0 : i32
    return %c0_i32, %c0_i32_0 : i32, i32
  }
}

</mosaic_0001>

<bundles_post_ra>
// kernel: tpu_custom_call.1
= control target key start
LH: loop header
LB: loop body
LE: loop exit
PB: predicated region body
PF: predicated region fallthrough
CT: control target
= control target key end

     0   :  { %s462_s0 = inlined_call_operand.vmem [shape: f32[36,8], index: 0, kind: input, shape index: {}]   ;;  %s463_s1 = inlined_call_operand.vmem [shape: f32[36,8], index: 1, kind: input, shape index: {}]   ;;  %s464_s2 = inlined_call_operand.vmem [shape: f32[36,8], index: 2, kind: input, shape index: {}]   ;;  %s465_s3 = inlined_call_operand.vmem [shape: f32[36,8], index: 3, kind: output, shape index: {0}]   ;;  %s466_s4 = inlined_call_operand.hbm [shape: f32[1,1], index: 4, kind: output, shape index: {1}]  }
   0x1   :  { %v317_v0 = vld [vmem:[%s463_s1] sm:$0xff]  ;;  %v322_v1 = vld [vmem:[%s463_s1 + $0x8] sm:$0xff]  ;;  %v327_v2 = vld [vmem:[%s463_s1 + $0x10] sm:$0xff] }
   0x2   :  { %v332_v3 = vld [vmem:[%s463_s1 + $0x18] sm:$0xff]  ;;  %v37_v4 = vmul.f32 1.442695, %v317_v0  ;;  %v338_v5 = vld [vmem:[%s463_s1 + $0x20] sm:$0xf] }
   0x3   :  { %v39_v6 = vmul.f32 1.442695, %v322_v1  ;;  %v41_v7 = vmul.f32 1.442695, %v327_v2  ;;  %v43_v8 = vmul.f32 1.442695, %v332_v3 }
   0x4   :  { %231 = vpow2.f32 %v37_v4  ;;  %v45_v9 = vmul.f32 1.442695, %v338_v5 }
   0x5   :  { %233 = vpow2.f32 %v39_v6 }
   0x6   :  { %10 = vsyncpa [#allocation3], 0  ;;  %235 = vpow2.f32 %v41_v7  ;;  %vm32_vm0 = vcmp.lt.f32.partialorder %v317_v0, 50.0  ;;  %vm33_vm1 = vcmp.lt.f32.partialorder %v322_v1, 50.0  ;;  %vm34_vm2 = vcmp.lt.f32.partialorder %v327_v2, 50.0  ;;  %v27_v27 = vld [vmem:[%s464_s2] sm:$0xff] }
   0x7   :  { %237 = vpow2.f32 %v43_v8  ;;  %vm35_vm3 = vcmp.lt.f32.partialorder %v332_v3, 50.0  ;;  %vm107_vm5 = vcmask 64512   ;;  %v358_v36 = vld [vmem:[%s464_s2 + $0x8] sm:$0xff]  ;;  %vm36_vm6 = vcmp.lt.f32.partialorder %v338_v5, 50.0  ;;  %v17_v49 = vld [vmem:[%s462_s0] sm:$0xff]  ;;  %v29_v58 = vld [vmem:[%s464_s2 + $0x10] sm:$0xff] }
   0x8   :  { %239 = vpow2.f32 %v45_v9  ;;  %v129_v41 = vmul.f32 0.5, %v27_v27  ;;  %v362_v42 = vmul.f32 0.5, %v358_v36  ;;  %v30_v4 = vld [vmem:[%s464_s2 + $0x18] sm:$0xff]  ;;  %vm112_vm11 = vcmask 60416   ;;  %s216_s28 = sshll.u32 %s466_s4, 4  ;;  %s217_s28 = int_to_ptr.hbm [resolvable:$true] %s216_s28 }
   0x9   :  { %vm182_vm13 = vcmask 0  }
   0xa   :  { %v232_v10 = vpop.eup %231  ;;  %v134_v62 = vmul.f32 %v129_v41, %v27_v27 }
   0xb   :  { %v47_v11 = vadd.f32 1.0, %v232_v10  ;;  %v50_v12 = vmul.f32 -0.5, %v232_v10  ;;  %v234_v13 = vpop.eup %233  ;;  %v53_v19 = vand.u32 2147483647, %v232_v10 }
   0xc   :  { %v236_v14 = vpop.eup %235  ;;  %v56_v16 = vadd.f32 1.0, %v234_v13  ;;  %v59_v17 = vmul.f32 -0.5, %v234_v13  ;;  %v62_v25 = vand.u32 2147483647, %v234_v13 }
   0xd   :  { %241 = vlog2.f32 %v47_v11  ;;  %v51_v15 = vadd.f32 1.0, %v50_v12  ;;  %v238_v18 = vpop.eup %237  ;;  %v65_v20 = vadd.f32 1.0, %v236_v14  ;;  %v68_v21 = vmul.f32 -0.5, %v236_v14 }
   0xe   :  { %v240_v22 = vpop.eup %239  ;;  %243 = vlog2.f32 %v56_v16  ;;  %v74_v23 = vadd.f32 1.0, %v238_v18  ;;  %v60_v24 = vadd.f32 1.0, %v59_v17  ;;  %v77_v26 = vmul.f32 -0.5, %v238_v18 }
   0xf   :  { %245 = vlog2.f32 %v65_v20  ;;  %v52_v28 = vmul.f32 %v232_v10, %v51_v15  ;;  %v69_v29 = vadd.f32 1.0, %v68_v21  ;;  %v83_v30 = vadd.f32 1.0, %v240_v22  ;;  %v19_v10 = vld [vmem:[%s462_s0 + $0x10] sm:$0xff]  ;;  %v20_v15 = vld [vmem:[%s462_s0 + $0x18] sm:$0xff] }
  0x10   :  { %247 = vlog2.f32 %v74_v23  ;;  %vm351_vm4 = vcmp.lt.f32.partialorder %v53_v19, 0.0004427343  ;;  %v71_v33 = vand.u32 2147483647, %v236_v14  ;;  %v78_v34 = vadd.f32 1.0, %v77_v26 }
  0x11   :  { %v86_v35 = vmul.f32 -0.5, %v240_v22  ;;  %v80_v38 = vand.u32 2147483647, %v238_v18  ;;  %249 = vlog2.f32 %v83_v30  ;;  %v61_v39 = vmul.f32 %v234_v13, %v60_v24 }
  0x12   :  { %vm366_vm7 = vcmp.lt.f32.partialorder %v62_v25, 0.0004427343  ;;  %v70_v46 = vmul.f32 %v236_v14, %v69_v29  ;;  %v89_v47 = vand.u32 2147483647, %v240_v22  ;;  %vm373_vm8 = vcmp.lt.f32.partialorder %v71_v33, 0.0004427343 }
  0x13   :  { %v242_v31 = vpop.eup %241  ;;  %v87_v40 = vadd.f32 1.0, %v86_v35  ;;  %v79_v52 = vmul.f32 %v238_v18, %v78_v34  ;;  %vm380_vm9 = vcmp.lt.f32.partialorder %v80_v38, 0.0004427343  ;;  %v161_v24 = vlaneseq }
  0x14   :  { %v49_v37 = vmul.f32 0.6931472, %v242_v31  ;;  %v244_v43 = vpop.eup %243  ;;  %vm397_vm10 = vcmp.lt.f32.partialorder %v89_v47, 0.0004427343  ;;  %v132_v29 = vmul.f32 0.5, %v30_v4  ;;  %v135_v35 = vmul.f32 %v362_v42, %v358_v36 }
  0x15   :  { %v246_v48 = vpop.eup %245  ;;  %v58_v50 = vmul.f32 0.6931472, %v244_v43  ;;  %v88_v61 = vmul.f32 %v240_v22, %v87_v40  ;;  %v21_v22 = vld [vmem:[%s462_s0 + $0x20] sm:$0xf]  ;;  %v162_v43 = vshrl.u32 %v161_v24, 7 }
  0x16   :  { %v55_v44 = vsel %vm351_vm4, %v52_v28, %v49_v37  ;;  %v248_v54 = vpop.eup %247  ;;  %v67_v55 = vmul.f32 0.6931472, %v246_v48  ;;  %v131_v28 = vmul.f32 0.5, %v29_v58  ;;  %v137_v47 = vmul.f32 %v132_v29, %v30_v4 }
  0x17   :  { %v92_v53 = vsel %vm32_vm0, %v55_v44, %v317_v0  ;;  %v64_v59 = vsel %vm366_vm7, %v61_v39, %v58_v50  ;;  %v76_v60 = vmul.f32 0.6931472, %v248_v54  ;;  %v250_v63 = vpop.eup %249  ;;  %v18_v0 = vld [vmem:[%s462_s0 + $0x8] sm:$0xff] }
  0x18   :  { %v97_v57 = vmul.f32 %v92_v53, %v27_v27  ;;  %251 = vlog2.f32 %v92_v53  ;;  %v73_v6 = vsel %vm373_vm8, %v70_v46, %v67_v55  ;;  %v93_v8 = vsel %vm33_vm1, %v64_v59, %v322_v1  ;;  %v31_v1 = vld [vmem:[%s464_s2 + $0x20] sm:$0xf] }
  0x19   :  { %v82_v11 = vsel %vm380_vm9, %v79_v52, %v76_v60  ;;  %v85_v12 = vmul.f32 0.6931472, %v250_v63  ;;  %v94_v13 = vsel %vm34_vm2, %v73_v6, %v327_v2  ;;  %v98_v14 = vmul.f32 %v93_v8, %v358_v36 }
  0x1a   :  { %v102_v9 = vadd.f32 %v97_v57, %v17_v49  ;;  %v95_v16 = vsel %vm35_vm3, %v82_v11, %v332_v3  ;;  %v99_v17 = vmul.f32 %v94_v13, %v29_v58  ;;  %253 = vlog2.f32 %v93_v8 }
  0x1b   :  { %v91_v18 = vsel %vm397_vm10, %v88_v61, %v85_v12  ;;  %v100_v19 = vmul.f32 %v95_v16, %v30_v4  ;;  %v103_v20 = vadd.f32 %v98_v14, %v18_v0  ;;  %255 = vlog2.f32 %v94_v13 }
  0x1c   :  { %108 = vst.msk [vmem:[%s465_s3] sm:$0xff] %vm107_vm5, %v102_v9  ;;  %v144_v2 = vmul.f32 %v102_v9, %v102_v9  ;;  %v96_v3 = vsel %vm36_vm6, %v91_v18, %v338_v5  ;;  %v104_v23 = vadd.f32 %v99_v17, %v19_v10  ;;  %257 = vlog2.f32 %v95_v16 }
  0x1d   :  { %v101_v25 = vmul.f32 %v96_v3, %v31_v1  ;;  %v105_v26 = vadd.f32 %v100_v19, %v20_v15  ;;  %109 = vst.msk [vmem:[%s465_s3 + $0x8] sm:$0xff] %vm107_vm5, %v103_v20  ;;  %259 = vlog2.f32 %v96_v3  ;;  %v145_v31 = vmul.f32 %v103_v20, %v103_v20 }
  0x1e   :  { %v252_v21 = vpop.eup %251  ;;  %110 = vst.msk [vmem:[%s465_s3 + $0x10] sm:$0xff] %vm107_vm5, %v104_v23  ;;  %v149_v32 = vmul.f32 0.5, %v144_v2  ;;  %v133_v34 = vmul.f32 0.5, %v31_v1  ;;  %v146_v37 = vmul.f32 %v104_v23, %v104_v23  ;;  %v136_v46 = vmul.f32 %v131_v28, %v29_v58 }
  0x1f   :  { %v115_v27 = vmul.f32 0.6931472, %v252_v21  ;;  %v106_v5 = vadd.f32 %v101_v25, %v21_v22  ;;  %111 = vst.msk [vmem:[%s465_s3 + $0x18] sm:$0xff] %vm107_vm5, %v105_v26  ;;  %v147_v41 = vmul.f32 %v105_v26, %v105_v26  ;;  %v150_v36 = vmul.f32 0.5, %v145_v31 }
  0x20   :  { %v254_v33 = vpop.eup %253  ;;  %v138_v54 = vmul.f32 %v133_v34, %v31_v1  ;;  %v151_v55 = vmul.f32 0.5, %v146_v37  ;;  %v166_v60 = vadd.s32 32, %v162_v43  ;;  %v287_v2 = vmov 0.0  }
  0x21   :  { %v124_v30 = vsub.f32 0.0, %v115_v27  ;;  %v256_v38 = vpop.eup %255  ;;  %113 = vst.msk [vmem:[%s465_s3 + $0x20] sm:$0xf] %vm112_vm11, %v106_v5  ;;  %v117_v39 = vmul.f32 0.6931472, %v254_v33  ;;  %v148_v48 = vmul.f32 %v106_v5, %v106_v5  ;;  %v152_v59 = vmul.f32 0.5, %v147_v41 }
  0x22   :  { %v258_v44 = vpop.eup %257  ;;  %v119_v45 = vmul.f32 0.6931472, %v256_v38  ;;  %vm172_vm12 = vcmp.lt.s32.totalorder %v166_v60, 36  ;;  %183 = vst.msk [vmem:[#allocation2] sm:$0x1] %vm182_vm13, %v287_v2  ;;  %s288_s3 = smov [#allocation2]  }
  0x23   :  { %v139_v40 = vsub.f32 %v124_v30, %v134_v62  ;;  %v260_v49 = vpop.eup %259  ;;  %v121_v50 = vmul.f32 0.6931472, %v258_v44  ;;  %v125_v51 = vsub.f32 0.0, %v117_v39  ;;  %v153_v63 = vmul.f32 0.5, %v148_v48  ;;  %s214_s25 = sshll.u32 %s288_s3, 4  ;;  %s215_s25 = int_to_ptr.vmem [resolvable:$true] %s214_s25 }
  0x24   :  { %v123_v52 = vmul.f32 0.6931472, %v260_v49  ;;  %v126_v53 = vsub.f32 0.0, %v119_v45 }
  0x25   :  { %v154_v42 = vadd.f32 %v149_v32, %v139_v40  ;;  %v127_v56 = vsub.f32 0.0, %v121_v50  ;;  %v140_v57 = vsub.f32 %v125_v51, %v135_v35 }
  0x26   :  { %v128_v61 = vsub.f32 0.0, %v123_v52  ;;  %v141_v62 = vsub.f32 %v126_v53, %v136_v46 }
  0x27   :  { %v142_v0 = vsub.f32 %v127_v56, %v137_v47  ;;  %v155_v58 = vadd.f32 %v150_v36, %v140_v57  ;;  %v185_v4 = vsel %vm107_vm5, %v154_v42, 0.0 }
  0x28   :  { %v143_v6 = vsub.f32 %v128_v61, %v138_v54  ;;  %v156_v7 = vadd.f32 %v151_v55, %v141_v62 }
  0x29   :  { %v157_v8 = vadd.f32 %v152_v59, %v142_v0  ;;  %v186_v9 = vsel %vm107_vm5, %v155_v58, 0.0  ;;  %v184_v24 = vld [vmem:[#allocation2] sm:$0x1] }
  0x2a   :  { %v158_v10 = vadd.f32 %v153_v63, %v143_v6  ;;  %v187_v11 = vadd.f32 %v186_v9, %v185_v4  ;;  %v188_v12 = vsel %vm107_vm5, %v156_v7, 0.0 }
  0x2b   :  { %v190_v13 = vsel %vm107_vm5, %v157_v8, 0.0 }
  0x2c   :  { %v177_v14 = vsel %vm172_vm12, %v158_v10, 0.0  ;;  %v189_v15 = vadd.f32 %v188_v12, %v187_v11 }
  0x2d   :  { %v192_v1 = vsel %vm112_vm11, %v177_v14, 0.0 }
  0x2e   :  { %v191_v16 = vadd.f32 %v190_v13, %v189_v15 }
  0x30   :  { %v193_v17 = vadd.f32 %v192_v1, %v191_v16 }
  0x32   :  { %194 = vadd.xlane.f32.xlu0 %v193_v17 }
  0xa5   :  { %v195_v18 = vpop.xlane.xlu0 %194 }
  0xa6   :  { %v196_v19 = vrot.slane %v195_v18, 4 }
  0xa8   :  { %v197_v20 = vadd.f32 %v196_v19, %v195_v18 }
  0xaa   :  { %v198_v21 = vrot.slane %v197_v20, 2 }
  0xac   :  { %v199_v22 = vadd.f32 %v198_v21, %v197_v20 }
  0xae   :  { %v200_v3 = vrot.slane %v199_v22, 1 }
  0xb0   :  { %v201_v23 = vadd.f32 %v200_v3, %v199_v22 }
  0xb2   :  { %227 = vpush %v201_v23 }
  0xe3   :  { %s228_s29 = spop %227 }
  0xe4   :  { %v203_v25 = vstv %s228_s29 }
  0xe5   :  { %v204_v26 = vadd.f32 %v203_v25, %v184_v24 }
  0xe7   :  { %206 = vst.msk [vmem:[#allocation2] sm:$0x1] %vm182_vm13, %v204_v26 }
  0xe8   :  { %219 = dma.vmem_to_hbm [thread:$0]  %s215_s25, 16, %s217_s28, [#allocation3]  }
  0xe9   :  { %285 = dma.done.wait [#allocation3], 16  }
  0xea   :  { %286 = vsyncadd [#allocation3], 4294967280 }
  0xeb   :  { %226 = vsyncpa [#allocation3], 1 }

</bundles_post_ra>
